<compile_context>
chip_gen: v6e
topology: v6e:2x2x1
jax: 0.10.0
libtpu: 0.0.40
codegen_flags: <defaults>
</compile_context>

<pallas_src>
import jax
import jax.numpy as jnp
from jax import lax
from jax.experimental import pallas as pl
from jax.experimental.pallas import tpu as pltpu


def _round_up(n, m):
    return ((n + m - 1) // m) * m


def center_loss_kernel(labels_ref, x_ref, centers_ref, dist_ref):
    """One batch tile: clamped squared distance of each row to its class center.

    labels_ref : (TB, 1)  int32     VMEM  labels for this batch tile
    x_ref      : (TB, D)  f32/bf16  VMEM  feature tile (auto-pipelined)
    centers_ref: (C, D)   f32/bf16  VMEM  all class centers (resident block)
    dist_ref   : (TB, 1)  f32       VMEM  per-sample clamped squared distance
    """
    TB, D = x_ref.shape
    C = centers_ref.shape[0]

    labels = labels_ref[...]                                   # (TB, 1) int32
    class_ids = lax.broadcasted_iota(jnp.int32, (TB, C), 1)    # (TB, C)
    onehot = (labels == class_ids).astype(centers_ref.dtype)   # (TB, C)

    # center = centers[labels] via one-hot matmul on the MXU (C is tiny here).
    center = jnp.dot(onehot, centers_ref[...],
                     preferred_element_type=jnp.float32)       # (TB, D) f32

    diff = x_ref[...].astype(jnp.float32) - center             # (TB, D) f32
    dist = jnp.sum(diff * diff, axis=-1, keepdims=True)        # (TB, 1)
    dist_ref[...] = jnp.clip(dist, 1e-12, 1e12)                # torch.clamp


def center_loss(x, labels, centers, *, batch_block=512):
    """CenterLoss forward: mean_i clamp(||x_i - centers[labels_i]||^2, 1e-12, 1e12)."""
    B, D = x.shape
    C, Dc = centers.shape
    assert D == Dc

    labels2d = labels.astype(jnp.int32).reshape(B, 1)

    # Pad the class axis up to a sublane multiple so the resident centers block
    # is tile-aligned (padded rows are zero and never selected: labels < C).
    C_pad = _round_up(max(C, 8), 8)
    if C_pad != C:
        centers = jnp.pad(centers, ((0, C_pad - C), (0, 0)))

    # Batch tile: multiple of 8 sublanes, large enough for good DMA pipelining.
    TB = min(batch_block, _round_up(B, 8))
    num_tiles = pl.cdiv(B, TB)
    B_pad = num_tiles * TB

    dists = pl.pallas_call(
        center_loss_kernel,
        grid=(num_tiles,),
        out_shape=jax.ShapeDtypeStruct((B_pad, 1), jnp.float32),
        in_specs=[
            # labels tile (vector needed for the one-hot compare)
            pl.BlockSpec((TB, 1), lambda i: (i, 0)),
            # x tile, pipelined over the batch
            pl.BlockSpec((TB, D), lambda i: (i, 0)),
            # centers: same block every step -> loaded once, stays resident
            pl.BlockSpec((C_pad, D), lambda i: (0, 0)),
        ],
        out_specs=pl.BlockSpec((TB, 1), lambda i: (i, 0)),
        compiler_params=pltpu.CompilerParams(
            dimension_semantics=("parallel",)),   # megacore-shardable on v7x
    )(labels2d, x, centers)

    # Tiny finalize outside the kernel: mean over the *true* batch only
    # (drops any rows belonging to the padded last tile).
    return jnp.sum(dists[:B, 0]) / B


def reference_center_loss(x, labels, centers):
    center = centers[labels]
    dist = jnp.sum((x - center) ** 2, axis=-1)
    return jnp.mean(jnp.clip(dist, 1e-12, 1e12))


if __name__ == "__main__":
    num_classes = 7
    feat_dim = 128
    batch = 8

    key = jax.random.PRNGKey(0)
    k_x, k_lbl, k_c = jax.random.split(key, 3)

    # Deterministic "parameter" init (module.__init__: torch.randn(C, D)).
    centers = jax.random.normal(k_c, (num_classes, feat_dim), dtype=jnp.float32)

    x = jax.random.normal(k_x, (batch, feat_dim), dtype=jnp.float32)
    labels = jax.random.randint(k_lbl, (batch,), 0, num_classes, dtype=jnp.int32)

    loss = center_loss(x, labels, centers)
    jax.block_until_ready(loss)

    ref = reference_center_loss(x, labels, centers)
    assert jnp.allclose(loss, ref, rtol=1e-5, atol=1e-5), (loss, ref)

    print("KERNEL_OK")
</pallas_src>

<mosaic_0001>
module attributes {stable_mosaic.version = 11 : i64} {
  func.func @center_loss_kernel(%arg0: i32, %arg1: memref<8x1xi32, #tpu.memory_space<vmem>>, %arg2: memref<8x128xf32, #tpu.memory_space<vmem>>, %arg3: memref<8x128xf32, #tpu.memory_space<vmem>>, %arg4: memref<8x1xf32, #tpu.memory_space<vmem>>) attributes {dimension_semantics = [#tpu.dimension_semantics<parallel>], iteration_bounds = array<i64: 1>, scalar_prefetch = 0 : i64, scratch_operands = 0 : i64, tpu.core_type = #tpu.core_type<tc>, window_params = [{transform_indices = @transform_0, window_bounds = array<i64: 8, 1>}, {transform_indices = @transform_1, window_bounds = array<i64: 8, 128>}, {pipeline_mode = #tpu.pipeline_mode<synchronous>, transform_indices = @transform_2, window_bounds = array<i64: 8, 128>}, {transform_indices = @transform_3, window_bounds = array<i64: 8, 1>}]} {
    %c0 = arith.constant 0 : index
    %c0_0 = arith.constant 0 : index
    %0 = vector.load %arg1[%c0, %c0_0] : memref<8x1xi32, #tpu.memory_space<vmem>>, vector<8x1xi32>
    %1 = tpu.iota {dimensions = array<i32: 1>} : vector<8x8xi32>
    %2 = vector.broadcast %0 : vector<8x1xi32> to vector<8x8xi32>
    %3 = arith.cmpi eq, %2, %1 : vector<8x8xi32>
    %4 = arith.extui %3 : vector<8x8xi1> to vector<8x8xi32>
    %5 = arith.sitofp %4 : vector<8x8xi32> to vector<8x8xf32>
    %c0_1 = arith.constant 0 : index
    %c0_2 = arith.constant 0 : index
    %6 = vector.load %arg3[%c0_1, %c0_2] : memref<8x128xf32, #tpu.memory_space<vmem>>, vector<8x128xf32>
    %cst = arith.constant dense<0.000000e+00> : vector<8x128xf32>
    %7 = tpu.matmul %5, %6, %cst {dimension_numbers = #tpu.dot_dimension_numbers<[1], [0], [0], [1], [0, 0, 1, 1], [], []>} : vector<8x8xf32>, vector<8x128xf32>, vector<8x128xf32> -> vector<8x128xf32>
    %c0_3 = arith.constant 0 : index
    %c0_4 = arith.constant 0 : index
    %8 = vector.load %arg2[%c0_3, %c0_4] : memref<8x128xf32, #tpu.memory_space<vmem>>, vector<8x128xf32>
    %9 = arith.subf %8, %7 : vector<8x128xf32>
    %10 = arith.mulf %9, %9 : vector<8x128xf32>
    %cst_5 = arith.constant dense<0.000000e+00> : vector<8xf32>
    %11 = vector.multi_reduction <add>, %10, %cst_5 [1] : vector<8x128xf32> to vector<8xf32>
    %12 = vector.shape_cast %11 : vector<8xf32> to vector<8x1xf32>
    %cst_6 = arith.constant 9.99999996E-13 : f32
    %cst_7 = arith.constant 9.99999995E+11 : f32
    %13 = vector.broadcast %cst_6 : f32 to vector<8x1xf32>
    %14 = arith.maximumf %13, %12 : vector<8x1xf32>
    %15 = vector.broadcast %cst_7 : f32 to vector<8x1xf32>
    %16 = arith.minimumf %15, %14 : vector<8x1xf32>
    %c0_8 = arith.constant 0 : index
    %c0_9 = arith.constant 0 : index
    %17 = vector.load %arg4[%c0_8, %c0_9] : memref<8x1xf32, #tpu.memory_space<vmem>>, vector<8x1xf32>
    tpu.vector_store %arg4[%c0_8, %c0_9], %16 {strides = array<i32>} : memref<8x1xf32, #tpu.memory_space<vmem>>, vector<8x1xf32>,
    return
  }
  func.func @transform_0(%arg0: i32) -> (i32, i32) {
    %c0_i32 = arith.constant 0 : i32
    %c0_i32_0 = arith.constant 0 : i32
    return %arg0, %c0_i32 : i32, i32
  }
  func.func @transform_1(%arg0: i32) -> (i32, i32) {
    %c0_i32 = arith.constant 0 : i32
    %c0_i32_0 = arith.constant 0 : i32
    return %arg0, %c0_i32 : i32, i32
  }
  func.func @transform_2(%arg0: i32) -> (i32, i32) {
    %c0_i32 = arith.constant 0 : i32
    %c0_i32_0 = arith.constant 0 : i32
    %c0_i32_1 = arith.constant 0 : i32
    return %c0_i32, %c0_i32_0 : i32, i32
  }
  func.func @transform_3(%arg0: i32) -> (i32, i32) {
    %c0_i32 = arith.constant 0 : i32
    %c0_i32_0 = arith.constant 0 : i32
    return %arg0, %c0_i32 : i32, i32
  }
}

</mosaic_0001>

<bundles_post_ra>
// kernel: tpu_custom_call.1
= control target key start
LH: loop header
LB: loop body
LE: loop exit
PB: predicated region body
PF: predicated region fallthrough
CT: control target
= control target key end

     0   :  { %8 = vsyncpa [#allocation3], 0  ;;  %s160_s12 = smov [#allocation2]   ;;  %s196_s0 = inlined_call_operand.vmem [shape: s32[8,1], index: 0, kind: input, shape index: {}]   ;;  %s197_s1 = inlined_call_operand.vmem [shape: f32[8,128], index: 1, kind: input, shape index: {}]   ;;  %s198_s2 = inlined_call_operand.hbm [shape: f32[8,128], index: 2, kind: input, shape index: {}]   ;;  %s199_s3 = inlined_call_operand.vmem [shape: f32[8,1], index: 3, kind: output, shape index: {}]  }
   0x1   :  { %s19_s13 = sshll.u32 %s160_s12, 4  ;;  %s20_s13 = int_to_ptr.vmem [resolvable:$true] %s19_s13 }
   0x2   :  { %s146_s14 = scalar_lea.vmem %s20_s13, 128  ;;  %p151_p1 = scmp.lt.s32.totalorder %s20_s13, %s20_s13 }
   0x3   :  { %p147_p0 = scmp.ne.s32.totalorder %s20_s13, %s146_s14  ;;  %p152_p2 = scmp.lt.s32.totalorder %s146_s14, %s146_s14 }
   0x5   :  { %p153_p3 = por %p152_p2, %p151_p1 }
   0x7   :  { %p154_p4 = pnand %p153_p3, %p147_p0 }
   0x9   :  { %157 = shalt.err (!%p154_p4)
}
   0xa   :  { %22 = dma.hbm_to_vmem [thread:$0]  %s198_s2, 128, %s20_s13, [#allocation3]  }
   0xb   :  { %158 = dma.done.wait [#allocation3], 128  }
   0xc   :  { %159 = vsyncadd [#allocation3], 4294967168  ;;  %v161_v0 = vmov 0   ;;  %v162_v1 = vmov 0.0   ;;  %vm163_vm0 = vmmov 0   ;;  %v26_v2 = vld [vmem:[%s196_s0] sm:$0xff]  ;;  %v27_v4 = vlaneseq }
   0xd   :  { %137 = vset.pattern.permute.xlu0 %v161_v0  ;;  %128 = vmatprep.subr.mxu0 %v162_v1  ;;  %v35_v3 = vld [vmem:[#allocation2] sm:$0xff]  ;;  %vm36_vm1 = vcmask 64512   ;;  %vm117_vm3 = vcmask 7168  }
   0xe   :  { %130 = vmatprep.mubr.msk.f32.mxu0 %vm163_vm0, %v162_v1  ;;  %30 = vperm.xlu0 %137, %v26_v2   ;;  %v28_v5 = vand.u32 127, %v27_v4  ;;  %v110_v8 = vld [vmem:[%s197_s1] sm:$0xff] }
   0xf   :  { %129 = vmatpush3.msra.mxu0 %v35_v3 }
  0x89   :  { %v31_v6 = vpop.permute.xlu0 %30 }
  0x8a   :  { %vm32_vm2 = vcmp.eq.s32.totalorder %v31_v6, %v28_v5 }
  0x8b   :  { %v124_v7 = vsel %vm32_vm2, 1.0, %v162_v1 }
  0x8c   :  { %131 = vmatmul.mubr.msk.f32.vlgmr.msra.gmra.mxu0 %vm36_vm1, %v124_v7 }
 0x14c   :  { %v106_v9 = vpop.f32.mrf.mxu0 }
 0x14d   :  { %v111_v10 = vsub.f32 %v110_v8, %v106_v9 }
 0x14e   :  { %v132_v11 = vpop.f32.mrf.mxu0 }
 0x14f   :  { %v112_v12 = vmul.f32 %v111_v10, %v111_v10 }
 0x151   :  { %113 = vadd.xlane.f32.xlu0 %v112_v12 }
 0x1da   :  { %v114_v13 = vpop.xlane.xlu0 %113 }
 0x1db   :  { %v115_v14 = vmax.f32 %v114_v13, 1e-12 }
 0x1dd   :  { %v116_v15 = vmin.f32 %v115_v14, 1e+12 }
 0x1df   :  { %118 = vst.msk [vmem:[%s199_s3] sm:$0xff] %vm117_vm3, %v116_v15 }
 0x1e0   :  { %123 = vsyncpa [#allocation3], 1 }

</bundles_post_ra>
